<compile_context>
chip_gen: v6e
topology: v6e:2x2x1
jax: 0.10.0
libtpu: 0.0.40
codegen_flags: <defaults>
</compile_context>

<pallas_src>
import functools

import jax
import jax.numpy as jnp
from jax.experimental import pallas as pl
from jax.experimental.pallas import tpu as pltpu


def _ls_ce_kernel(x_ref, tgt_ref, out_ref, *,
                  smoothing: float, n_total: int, tile_rows: int, num_classes: int):
    i = pl.program_id(0)

    x_raw = x_ref[...]                         # (TN, C) native dtype (f32 or bf16)
    x = x_raw.astype(jnp.float32)              # f32 compute (v5e has no bf16 VPU/EUP)
    tgt = tgt_ref[...]                         # (TN, 1) int32
    tn, c = x.shape

    # Validity mask for padded rows in the final tile (keep jnp.where masking:
    # it does not propagate NaN/Inf from the unselected garbage rows).
    row_id = i * tile_rows + jax.lax.broadcasted_iota(jnp.int32, (tn, 1), 0)
    valid = row_id < n_total                   # (TN, 1) bool

    # Row statistics.
    m = jnp.max(x, axis=-1, keepdims=True)                                   # (TN, 1)
    lse = jnp.log(jnp.sum(jnp.exp(x - m), axis=-1, keepdims=True))           # (TN, 1)
    sum_x = jnp.sum(x, axis=-1, keepdims=True)                               # (TN, 1)

    # Target-logit gather: compare + select on the native-dtype vregs (exact for bf16,
    # exploits packed bf16 VALU on v6e/v7x), then cast the single surviving value to f32.
    col = jax.lax.broadcasted_iota(jnp.int32, (tn, c), 1)
    picked = jnp.where(col == tgt, x_raw, jnp.zeros_like(x_raw))             # (TN, C)
    x_t = jnp.sum(picked.astype(jnp.float32), axis=-1, keepdims=True)        # (TN, 1)

    # Fused label-smoothing CE:
    #   nll    = (m + lse) - x_t
    #   smooth = (m + lse) - sum(x)/C
    #   loss   = confidence*nll + smoothing*smooth
    confidence = 1.0 - smoothing
    loss = (m + lse) - confidence * x_t - (smoothing / num_classes) * sum_x  # (TN, 1)
    loss = jnp.where(valid, loss, 0.0)

    # Lane-dense per-tile partial sum (no carried state -> grid axis is "parallel").
    partial = jnp.sum(loss)                                                  # scalar f32
    out_ref[...] = jnp.broadcast_to(partial, out_ref.shape).astype(jnp.float32)


def label_smoothing_cross_entropy(x, target, smoothing: float = 0.1, tile_rows=None):
    """x: (N, C) float logits (f32 or bf16); target: (N,) int class ids. Returns scalar f32."""
    N, C = x.shape
    tgt2d = target.astype(jnp.int32).reshape(N, 1)

    if tile_rows is None:
        # Size the row tile by bytes: target ~4 MiB per x block (double-buffered -> ~8 MiB
        # resident), up to 8192 rows.  Big enough to reach the HBM roofline, small enough
        # to stay far below v7x's 64 MiB physical VMEM.
        bytes_per_row = C * x.dtype.itemsize
        budget = 4 * 1024 * 1024
        tile_rows = int(max(8, min(8192, (budget // max(bytes_per_row, 1)) // 8 * 8)))
    # Never tile wider than the (8-padded) batch; keep it a multiple of 8.
    tile_rows = int(min(tile_rows, ((N + 7) // 8) * 8))
    tile_rows = max(8, (tile_rows // 8) * 8)

    num_tiles = pl.cdiv(N, tile_rows)
    grid = (num_tiles,)

    # Explicit VMEM budget: double-buffered x + tgt + per-tile output blocks, plus slack.
    x_block_bytes = tile_rows * C * x.dtype.itemsize
    tgt_block_bytes = tile_rows * 4
    out_block_bytes = 8 * 128 * 4
    vmem_limit = 2 * (x_block_bytes + tgt_block_bytes + out_block_bytes) + (2 << 20)
    vmem_limit = int(min(max(vmem_limit, 4 << 20), 28 << 20))   # v7x-safe ceiling

    kernel = functools.partial(_ls_ce_kernel, smoothing=float(smoothing),
                               n_total=N, tile_rows=tile_rows, num_classes=C)

    partials = pl.pallas_call(
        kernel,
        out_shape=jax.ShapeDtypeStruct((num_tiles, 8, 128), jnp.float32),
        grid=grid,
        in_specs=[
            pl.BlockSpec((tile_rows, C), lambda i: (i, 0)),
            pl.BlockSpec((tile_rows, 1), lambda i: (i, 0)),
        ],
        out_specs=pl.BlockSpec((1, 8, 128), lambda i: (i, 0, 0)),
        compiler_params=pltpu.CompilerParams(
            dimension_semantics=("parallel",),
            vmem_limit_bytes=vmem_limit,
        ),
    )(x, tgt2d)

    # Tiny final reduction + mean in plain JAX (one f32 value per tile).
    return jnp.sum(partials[:, 0, 0]) / jnp.float32(N)


def _reference(x, target, smoothing=0.1):
    logprobs = jax.nn.log_softmax(x.astype(jnp.float32), axis=-1)
    nll = -jnp.take_along_axis(logprobs, target[:, None].astype(jnp.int32), axis=-1)[:, 0]
    smooth = -jnp.mean(logprobs, axis=-1)
    return jnp.mean((1.0 - smoothing) * nll + smoothing * smooth)


if __name__ == "__main__":
    key = jax.random.PRNGKey(0)
    kx, kt, kx2, kt2, kx3, kt3 = jax.random.split(key, 6)

    # Small shapes consistent with the module: batch=8, num_classes=32 (f32 logits).
    N, C = 8, 32
    x = jax.random.normal(kx, (N, C), dtype=jnp.float32)
    target = jax.random.randint(kt, (N,), 0, C, dtype=jnp.int32)
    loss = label_smoothing_cross_entropy(x, target, smoothing=0.1)
    jax.block_until_ready(loss)
    ref = _reference(x, target, 0.1)
    assert jnp.allclose(loss, ref, atol=1e-5, rtol=1e-5), (loss, ref)

    # Ragged batch: N not a multiple of the row tile -> exercises multi-tile parallel
    # partials and padded-row masking in the last tile.
    N2, C2 = 12, 32
    x2 = jax.random.normal(kx2, (N2, C2), dtype=jnp.float32)
    target2 = jax.random.randint(kt2, (N2,), 0, C2, dtype=jnp.int32)
    loss2 = label_smoothing_cross_entropy(x2, target2, smoothing=0.1, tile_rows=8)
    jax.block_until_ready(loss2)
    ref2 = _reference(x2, target2, 0.1)
    assert jnp.allclose(loss2, ref2, atol=1e-5, rtol=1e-5), (loss2, ref2)

    # bf16 logits end-to-end (half the HBM traffic); kernel casts to f32 on-chip.
    N3, C3 = 16, 32
    x3 = jax.random.normal(kx3, (N3, C3), dtype=jnp.float32).astype(jnp.bfloat16)
    target3 = jax.random.randint(kt3, (N3,), 0, C3, dtype=jnp.int32)
    loss3 = label_smoothing_cross_entropy(x3, target3, smoothing=0.1, tile_rows=8)
    jax.block_until_ready(loss3)
    ref3 = _reference(x3, target3, 0.1)   # reference also sees the bf16-quantized values
    assert jnp.allclose(loss3, ref3, atol=2e-5, rtol=2e-5), (loss3, ref3)

    print("KERNEL_OK")
</pallas_src>

<mosaic_0001>
module attributes {stable_mosaic.version = 11 : i64} {
  func.func @_ls_ce_kernel(%arg0: i32, %arg1: memref<8x32xf32, #tpu.memory_space<vmem>>, %arg2: memref<8x1xi32, #tpu.memory_space<vmem>>, %arg3: memref<1x8x128xf32, #tpu.memory_space<vmem>>) attributes {dimension_semantics = [#tpu.dimension_semantics<parallel>], iteration_bounds = array<i64: 1>, scalar_prefetch = 0 : i64, scratch_operands = 0 : i64, tpu.core_type = #tpu.core_type<tc>, window_params = [{transform_indices = @transform_0, window_bounds = array<i64: 8, 32>}, {transform_indices = @transform_1, window_bounds = array<i64: 8, 1>}, {transform_indices = @transform_2, window_bounds = array<i64: 1, 8, 128>}]} {
    %c0 = arith.constant 0 : index
    %c0_0 = arith.constant 0 : index
    %0 = vector.load %arg1[%c0, %c0_0] : memref<8x32xf32, #tpu.memory_space<vmem>>, vector<8x32xf32>
    %c0_1 = arith.constant 0 : index
    %c0_2 = arith.constant 0 : index
    %1 = vector.load %arg2[%c0_1, %c0_2] : memref<8x1xi32, #tpu.memory_space<vmem>>, vector<8x1xi32>
    %c8_i32 = arith.constant 8 : i32
    %2 = arith.muli %arg0, %c8_i32 : i32
    %3 = tpu.iota {dimensions = array<i32: 0>} : vector<8x1xi32>
    %4 = vector.broadcast %2 : i32 to vector<8x1xi32>
    %5 = arith.addi %4, %3 : vector<8x1xi32>
    %c8_i32_3 = arith.constant 8 : i32
    %6 = vector.broadcast %c8_i32_3 : i32 to vector<8x1xi32>
    %7 = arith.cmpi slt, %5, %6 : vector<8x1xi32>
    %cst = arith.constant dense<0xFF800000> : vector<8xf32>
    %8 = vector.multi_reduction <maximumf>, %0, %cst [1] : vector<8x32xf32> to vector<8xf32>
    %9 = vector.shape_cast %8 : vector<8xf32> to vector<8x1xf32>
    %10 = vector.broadcast %9 : vector<8x1xf32> to vector<8x32xf32>
    %11 = arith.subf %0, %10 : vector<8x32xf32>
    %12 = math.exp %11 : vector<8x32xf32>
    %cst_4 = arith.constant dense<0.000000e+00> : vector<8xf32>
    %13 = vector.multi_reduction <add>, %12, %cst_4 [1] : vector<8x32xf32> to vector<8xf32>
    %14 = vector.shape_cast %13 : vector<8xf32> to vector<8x1xf32>
    %15 = math.log %14 : vector<8x1xf32>
    %cst_5 = arith.constant dense<0.000000e+00> : vector<8xf32>
    %16 = vector.multi_reduction <add>, %0, %cst_5 [1] : vector<8x32xf32> to vector<8xf32>
    %17 = vector.shape_cast %16 : vector<8xf32> to vector<8x1xf32>
    %18 = tpu.iota {dimensions = array<i32: 1>} : vector<8x32xi32>
    %19 = vector.broadcast %1 : vector<8x1xi32> to vector<8x32xi32>
    %20 = arith.cmpi eq, %18, %19 : vector<8x32xi32>
    %cst_6 = arith.constant 0.000000e+00 : f32
    %21 = vector.broadcast %cst_6 : f32 to vector<8x32xf32>
    %22 = arith.select %20, %0, %21 : vector<8x32xi1>, vector<8x32xf32>
    %cst_7 = arith.constant dense<0.000000e+00> : vector<8xf32>
    %23 = vector.multi_reduction <add>, %22, %cst_7 [1] : vector<8x32xf32> to vector<8xf32>
    %24 = vector.shape_cast %23 : vector<8xf32> to vector<8x1xf32>
    %25 = arith.addf %9, %15 : vector<8x1xf32>
    %cst_8 = arith.constant 0.899999976 : f32
    %26 = vector.broadcast %cst_8 : f32 to vector<8x1xf32>
    %27 = arith.mulf %26, %24 : vector<8x1xf32>
    %28 = arith.subf %25, %27 : vector<8x1xf32>
    %cst_9 = arith.constant 3.125000e-03 : f32
    %29 = vector.broadcast %cst_9 : f32 to vector<8x1xf32>
    %30 = arith.mulf %29, %17 : vector<8x1xf32>
    %31 = arith.subf %28, %30 : vector<8x1xf32>
    %cst_10 = arith.constant 0.000000e+00 : f32
    %32 = vector.broadcast %cst_10 : f32 to vector<8x1xf32>
    %33 = arith.select %7, %31, %32 : vector<8x1xi1>, vector<8x1xf32>
    %34 = vector.shape_cast %33 : vector<8x1xf32> to vector<1x8x1xf32>
    %cst_11 = arith.constant dense<0.000000e+00> : vector<1xf32>
    %35 = vector.multi_reduction <add>, %34, %cst_11 [1, 2] : vector<1x8x1xf32> to vector<1xf32>
    %36 = vector.shape_cast %35 : vector<1xf32> to vector<1x1x1xf32>
    %37 = vector.extract %36[0, 0, 0] : f32 from vector<1x1x1xf32>
    %38 = vector.broadcast %37 : f32 to vector<1x8x128xf32>
    %c0_12 = arith.constant 0 : index
    %c0_13 = arith.constant 0 : index
    %c0_14 = arith.constant 0 : index
    %39 = vector.load %arg3[%c0_12, %c0_13, %c0_14] : memref<1x8x128xf32, #tpu.memory_space<vmem>>, vector<1x8x128xf32>
    tpu.vector_store %arg3[%c0_12, %c0_13, %c0_14], %38 {strides = array<i32>} : memref<1x8x128xf32, #tpu.memory_space<vmem>>, vector<1x8x128xf32>,
    return
  }
  func.func @transform_0(%arg0: i32) -> (i32, i32) {
    %c0_i32 = arith.constant 0 : i32
    %c0_i32_0 = arith.constant 0 : i32
    return %arg0, %c0_i32 : i32, i32
  }
  func.func @transform_1(%arg0: i32) -> (i32, i32) {
    %c0_i32 = arith.constant 0 : i32
    %c0_i32_0 = arith.constant 0 : i32
    return %arg0, %c0_i32 : i32, i32
  }
  func.func @transform_2(%arg0: i32) -> (i32, i32, i32) {
    %c0_i32 = arith.constant 0 : i32
    %c0_i32_0 = arith.constant 0 : i32
    %c0_i32_1 = arith.constant 0 : i32
    return %arg0, %c0_i32, %c0_i32_0 : i32, i32, i32
  }
}

</mosaic_0001>

<bundles_post_ra>
// kernel: tpu_custom_call.1
= control target key start
LH: loop header
LB: loop body
LE: loop exit
PB: predicated region body
PF: predicated region fallthrough
CT: control target
= control target key end

     0   :  { %vm20_vm0 = vcmask 261120   ;;  %s139_s0 = inlined_call_operand.vmem [shape: f32[8,32], index: 0, kind: input, shape index: {}]   ;;  %s140_s1 = inlined_call_operand.vmem [shape: s32[8,1], index: 1, kind: input, shape index: {}]   ;;  %s141_s2 = inlined_call_operand.hbm [shape: f32[1,8,128], index: 2, kind: output, shape index: {}]  }
   0x1   :  { %v12_v0 = vld [vmem:[%s139_s0] sm:$0xff] }
   0x2   :  { %7 = vsyncpa [#allocation3], 0  ;;  %v21_v1 = vsel %vm20_vm0, %v12_v0, -inf  ;;  %v109_v2 = vmov 0   ;;  %v13_v3 = vld [vmem:[%s140_s1] sm:$0xff]  ;;  %v35_v7 = vlaneseq  ;;  %v32_v14 = vsel %vm20_vm0, %v12_v0, 0.0 }
   0x3   :  { %82 = vset.pattern.permute.xlu0 %v109_v2  ;;  %vm51_vm2 = vcmask 7168   ;;  %s110_s0 = smov [#allocation2]  }
   0x4   :  { %22 = vmax.xlane.f32.xlu0 %v21_v1  ;;  %v36_v8 = vand.u32 127, %v35_v7  ;;  %s70_s1 = sshll.u32 %s110_s0, 4  ;;  %s71_s1 = int_to_ptr.vmem [resolvable:$true] %s70_s1 }
   0x5   :  { %s87_s14 = scalar_lea.vmem %s71_s1, 128  ;;  %p92_p1 = scmp.lt.s32.totalorder %s71_s1, %s71_s1 }
   0x6   :  { %p88_p0 = scmp.ne.s32.totalorder %s71_s1, %s87_s14  ;;  %p93_p2 = scmp.lt.s32.totalorder %s87_s14, %s87_s14 }
   0x8   :  { %p94_p3 = por %p93_p2, %p92_p1 }
   0xa   :  { %p95_p4 = pnand %p94_p3, %p88_p0 }
  0x1a   :  { %38 = vperm.xlu0 %82, %v13_v3  }
  0x8d   :  { %v23_v4 = vpop.xlane.xlu0 %22 }
  0x8e   :  { %v24_v5 = vsub.f32 %v12_v0, %v23_v4 }
  0x90   :  { %v25_v6 = vmul.f32 1.442695, %v24_v5 }
  0x92   :  { %83 = vpow2.f32 %v25_v6 }
  0x95   :  { %v39_v9 = vpop.permute.xlu0 %38 }
  0x96   :  { %vm40_vm1 = vcmp.eq.s32.totalorder %v36_v8, %v39_v9 }
  0x97   :  { %v41_v11 = vsel %vm40_vm1, %v12_v0, 0.0 }
  0x98   :  { %v42_v13 = vsel %vm20_vm0, %v41_v11, 0.0 }
  0x9f   :  { %v84_v10 = vpop.eup %83 }
  0xa0   :  { %v27_v12 = vsel %vm20_vm0, %v84_v10, 0.0 }
  0xa1   :  { %28 = vadd.xlane.f32.xlu1 %v27_v12 }
  0xa5   :  { %43 = vadd.xlane.f32.xlu1 %v42_v13 }
  0xa9   :  { %33 = vadd.xlane.f32.xlu1 %v32_v14 }
 0x12a   :  { %v29_v15 = vpop.xlane.xlu1 %28 }
 0x12b   :  { %85 = vlog2.f32 %v29_v15 }
 0x12e   :  { %v44_v16 = vpop.xlane.xlu1 %43 }
 0x12f   :  { %v46_v21 = vmul.f32 0.9, %v44_v16 }
 0x132   :  { %v34_v18 = vpop.xlane.xlu1 %33 }
 0x133   :  { %v48_v22 = vmul.f32 0.003125, %v34_v18 }
 0x138   :  { %v86_v17 = vpop.eup %85 }
 0x139   :  { %v31_v19 = vmul.f32 0.6931472, %v86_v17 }
 0x13b   :  { %v45_v20 = vadd.f32 %v31_v19, %v23_v4 }
 0x13d   :  { %v47_v23 = vsub.f32 %v45_v20, %v46_v21 }
 0x13f   :  { %v49_v24 = vsub.f32 %v47_v23, %v48_v22 }
 0x141   :  { %v52_v25 = vsel %vm51_vm2, %v49_v24, 0.0 }
 0x142   :  { %53 = vadd.xlane.f32.xlu1 %v52_v25 }
 0x1cb   :  { %v54_v26 = vpop.xlane.xlu1 %53 }
 0x1cc   :  { %v55_v27 = vrot.slane %v54_v26, 4 }
 0x1ce   :  { %v56_v28 = vadd.f32 %v55_v27, %v54_v26 }
 0x1d0   :  { %v57_v29 = vrot.slane %v56_v28, 2 }
 0x1d2   :  { %v58_v30 = vadd.f32 %v57_v29, %v56_v28 }
 0x1d4   :  { %v59_v31 = vrot.slane %v58_v30, 1 }
 0x1d6   :  { %v60_v32 = vadd.f32 %v59_v31, %v58_v30 }
 0x1d8   :  { %78 = vpush %v60_v32 }
 0x209   :  { %s79_s13 = spop %78 }
 0x20a   :  { %v62_v33 = vstv %s79_s13 }
 0x20b   :  { %63 = vst [vmem:[#allocation2] sm:$0xff] %v62_v33 }
 0x20c   :  { %98 = shalt.err (!%p95_p4)
}
 0x20d   :  { %73 = dma.vmem_to_hbm [thread:$0]  %s71_s1, 128, %s141_s2, [#allocation3]  }
 0x20e   :  { %107 = dma.done.wait [#allocation3], 128  }
 0x20f   :  { %108 = vsyncadd [#allocation3], 4294967168 }
 0x210   :  { %77 = vsyncpa [#allocation3], 1 }

</bundles_post_ra>
